<compile_context>
chip_gen: v5e
topology: v5e:2x2
jax: 0.10.0
libtpu: 0.0.40
codegen_flags: <defaults>
</compile_context>

<pallas_src>
import functools
import math

import jax
import jax.numpy as jnp
from jax.experimental import pallas as pl
from jax.experimental.pallas import tpu as pltpu


# ---------------------------------------------------------------------------
# Per-generation VMEM budgeting
# ---------------------------------------------------------------------------

def _vmem_capacity_bytes():
    try:
        cap = getattr(pltpu.get_tpu_info(), "vmem_capacity_bytes", None)
        if cap:
            return int(cap)
    except Exception:
        pass
    return 64 * 1024 * 1024          # conservative minimum (v7x per-TensorCore VMEM)


def _vmem_budget():
    """Returns (tile_footprint_budget_bytes, vmem_limit_bytes)."""
    cap = _vmem_capacity_bytes()
    # Footprint per grid step: 2x double-buffered (in + out) tiles plus one out-tile-sized
    # temporary for the register/VMEM concat feeding the final store.
    footprint = max(8 << 20, min(cap // 2 - (8 << 20), 56 << 20))   # ~24 MiB v7x, ~56 MiB v5e/v6e
    vmem_limit = int(max(footprint + (4 << 20),
                         min(cap - (16 << 20), footprint + (24 << 20))))
    return footprint, vmem_limit


def _round_up(v, m):
    return -(-v // m) * m


# ---------------------------------------------------------------------------
# Kernels
# ---------------------------------------------------------------------------

def _flip_lanes(x, width):
    """Reverse a (rows, width) block along the lane (minor) axis."""
    if width <= 1:
        return x
    if width >= 16:
        # One XLU reversal beats O(width) slice+concat once the pad is non-trivial.
        return jax.lax.rev(x, dimensions=(x.ndim - 1,))
    cols = [x[:, width - 1 - j:width - j] for j in range(width)]
    return jnp.concatenate(cols, axis=-1)


def _lane_pad_kernel(x_ref, o_ref, *, pad, length, groups):
    """Padded axis on lanes; `groups` original rows are packed per kernel row."""
    x = x_ref[...]                                      # (TN, groups*L)
    segs = []
    for g in range(groups):
        xg = x[:, g * length:(g + 1) * length]
        segs.append(-_flip_lanes(xg[:, :pad], pad))
        segs.append(xg)
        segs.append(-_flip_lanes(xg[:, length - pad:length], pad))
    # One lane-dense, full-width store per tile (no per-column masked stores).
    o_ref[...] = jnp.concatenate(segs, axis=-1)


def _sublane_pad_kernel(x_ref, o_ref, *, pad, length):
    """Padded axis on sublanes; trailing dims flattened onto lanes (dim != -1 path)."""
    x = x_ref[...]                                      # (TB, L, TW)
    # Center: one sublane-offset block store, lane-dense across TW.
    o_ref[:, pad:pad + length, :] = x
    # Front / back pads: `pad` full-lane-width row stores each (pad is small).
    for j in range(pad):
        o_ref[:, j:j + 1, :] = -x[:, pad - 1 - j:pad - j, :]
        o_ref[:, pad + length + j:pad + length + j + 1, :] = \
            -x[:, length - 1 - j:length - j, :]


# ---------------------------------------------------------------------------
# Tiling heuristics
# ---------------------------------------------------------------------------

def _choose_groups(n_rows, out_len, target=512, max_width=4096, max_groups=64):
    """Pack G consecutive rows per lane-row so the output store is lane-dense."""
    if out_len >= 128 or n_rows <= 1:
        return 1
    best = 1
    for g in range(1, n_rows + 1):
        if g > max_groups or g * out_len > max_width:
            break
        if n_rows % g:
            continue
        best = g
        if g * out_len >= target:
            break
    return best


def _lane_row_tile(n_rows, in_w, out_w, itemsize, footprint, total_bytes):
    per_row = (2 * in_w + 3 * out_w) * itemsize          # 2x(in+out) buffers + concat temp
    tn = max(8, (footprint // max(1, per_row)) // 8 * 8)
    n_rows_p8 = _round_up(n_rows, 8)
    # Keep >= ~8 grid steps on large inputs so megacore (v7x: 2 TCs) has work to shard.
    if total_bytes >= (2 << 20) and n_rows_p8 >= 64:
        tn = min(tn, max(8, _round_up(pl.cdiv(n_rows_p8, 8), 8)))
    if tn >= n_rows:
        return n_rows                                    # single step, full-dim block
    return tn


def _sublane_tiles(n_batch, length, width, out_p, itemsize, footprint, total_bytes):
    per_col = (2 * length + 3 * out_p) * itemsize        # bytes per (batch, lane) column
    if width <= 128 or per_col * width <= footprint:
        tw = width
    else:
        tw = max(128, (footprint // max(1, per_col)) // 128 * 128)
        tw = min(tw, (width // 128) * 128)
    tb = int(max(1, footprint // max(1, per_col * tw)))
    tb = min(tb, n_batch)
    if total_bytes >= (2 << 20) and n_batch >= 8 and \
            pl.cdiv(n_batch, tb) * pl.cdiv(width, tw) < 8:
        tb = min(tb, pl.cdiv(n_batch, 8))
    return tb, tw


# ---------------------------------------------------------------------------
# Public wrapper
# ---------------------------------------------------------------------------

def anti_reflection_pad1d(x, pad, dim=-1):
    """Pallas implementation of AntiReflectionPad1d.forward (anti-symmetric reflect pad)."""
    if pad <= 0:
        return x

    ndim = x.ndim
    d = dim % ndim
    length = x.shape[d]
    if pad > length:
        raise ValueError(f"pad ({pad}) must be <= size of padded dim ({length})")
    out_len = length + 2 * pad
    itemsize = jnp.dtype(x.dtype).itemsize
    footprint, vmem_limit = _vmem_budget()

    out_full_shape = x.shape[:d] + (out_len,) + x.shape[d + 1:]
    total_bytes = (math.prod(x.shape) + math.prod(out_full_shape)) * itemsize
    cost = pl.CostEstimate(
        flops=2 * pad * (math.prod(x.shape) // max(1, length)),   # just the negations
        transcendentals=0,
        bytes_accessed=total_bytes,
    )

    if d == ndim - 1:
        # ---- Lane-axis variant: padded axis is already the minor (lane) axis. ----
        lead_shape = x.shape[:-1]
        n_rows = math.prod(lead_shape) if lead_shape else 1
        x2 = x.reshape(n_rows, length)

        # Zero-copy row packing: keep the single output store lane-dense for short L.
        groups = _choose_groups(n_rows, out_len)
        pr = n_rows // groups
        in_w, out_w = groups * length, groups * out_len
        xp = x2.reshape(pr, in_w)

        tn = _lane_row_tile(pr, in_w, out_w, itemsize, footprint, total_bytes)
        grid = (pl.cdiv(pr, tn),)

        outp = pl.pallas_call(
            functools.partial(_lane_pad_kernel, pad=pad, length=length, groups=groups),
            out_shape=jax.ShapeDtypeStruct((pr, out_w), x.dtype),
            grid=grid,
            in_specs=[pl.BlockSpec((tn, in_w), lambda i: (i, 0))],
            out_specs=pl.BlockSpec((tn, out_w), lambda i: (i, 0)),
            compiler_params=pltpu.CompilerParams(
                dimension_semantics=("parallel",),
                vmem_limit_bytes=vmem_limit,
            ),
            cost_estimate=cost,
        )(xp)
        return outp.reshape(lead_shape + (out_len,))

    # ---- Sublane-axis variant: padded axis stays on sublanes, trailing dims on lanes.
    # Avoids the two extra HBM transpose passes a moveaxis-to-last wrapper would pay.
    n_batch = math.prod(x.shape[:d]) if d else 1
    width = math.prod(x.shape[d + 1:])
    x3 = x.reshape(n_batch, length, width)

    tb, tw = _sublane_tiles(n_batch, length, width, out_len, itemsize, footprint, total_bytes)
    grid = (pl.cdiv(n_batch, tb), pl.cdiv(width, tw))

    out3 = pl.pallas_call(
        functools.partial(_sublane_pad_kernel, pad=pad, length=length),
        out_shape=jax.ShapeDtypeStruct((n_batch, out_len, width), x.dtype),
        grid=grid,
        in_specs=[pl.BlockSpec((tb, length, tw), lambda i, j: (i, 0, j))],
        out_specs=pl.BlockSpec((tb, out_len, tw), lambda i, j: (i, 0, j)),
        compiler_params=pltpu.CompilerParams(
            dimension_semantics=("parallel", "parallel"),
            vmem_limit_bytes=vmem_limit,
        ),
        cost_estimate=cost,
    )(x3)
    return out3.reshape(out_full_shape)


# ---------------------------------------------------------------------------
# Reference + self-test
# ---------------------------------------------------------------------------

def _reference(x, pad, dim=-1):
    if pad <= 0:
        return x
    xm = jnp.moveaxis(x, dim, -1)
    front = -jnp.flip(xm[..., :pad], axis=-1)
    back = -jnp.flip(xm[..., xm.shape[-1] - pad:], axis=-1)
    out = jnp.concatenate([front, xm, back], axis=-1)
    return jnp.moveaxis(out, -1, dim)


if __name__ == "__main__":
    key = jax.random.PRNGKey(0)
    k1, k2, k3, k4 = jax.random.split(key, 4)

    # 1) Conv-style (batch, channels, length), pad along last dim (packed lane path).
    x1 = jax.random.normal(k1, (2, 4, 16), dtype=jnp.float32)
    y1 = jax.block_until_ready(anti_reflection_pad1d(x1, 3, dim=-1))
    assert y1.shape == (2, 4, 22), y1.shape
    assert jnp.allclose(y1, _reference(x1, 3, dim=-1), atol=1e-6, rtol=1e-6), "mismatch (packed)"

    # 2) Many-row, short-L input: exercises non-trivial row packing (G=20 of 520 rows).
    x2 = jax.random.normal(k2, (8, 65, 33), dtype=jnp.float32)
    y2 = jax.block_until_ready(anti_reflection_pad1d(x2, 2, dim=-1))
    assert y2.shape == (8, 65, 37), y2.shape
    assert jnp.allclose(y2, _reference(x2, 2, dim=-1), atol=1e-6, rtol=1e-6), "mismatch (tiled)"

    # 3) Wide rows (out_len >= 128): unpacked lane path.
    x3 = jax.random.normal(k3, (4, 32, 200), dtype=jnp.float32)
    y3 = jax.block_until_ready(anti_reflection_pad1d(x3, 4, dim=-1))
    assert y3.shape == (4, 32, 208), y3.shape
    assert jnp.allclose(y3, _reference(x3, 4, dim=-1), atol=1e-6, rtol=1e-6), "mismatch (wide)"

    # 4) Non-trailing dim: sublane-axis kernel, no HBM transpose passes.
    x4 = jax.random.normal(k4, (2, 16, 4), dtype=jnp.float32)
    y4 = jax.block_until_ready(anti_reflection_pad1d(x4, 2, dim=1))
    assert y4.shape == (2, 20, 4), y4.shape
    assert jnp.allclose(y4, _reference(x4, 2, dim=1), atol=1e-6, rtol=1e-6), "mismatch (dim=1)"

    print("KERNEL_OK")
</pallas_src>

<mosaic_0001>
module attributes {stable_mosaic.version = 11 : i64} {
  func.func @_lane_pad_kernel(%arg0: i32, %arg1: memref<1x128xf32, #tpu.memory_space<vmem>>, %arg2: memref<1x176xf32, #tpu.memory_space<vmem>>) attributes {dimension_semantics = [#tpu.dimension_semantics<parallel>], iteration_bounds = array<i64: 1>, scalar_prefetch = 0 : i64, scratch_operands = 0 : i64, tpu.core_type = #tpu.core_type<tc>, window_params = [{transform_indices = @transform_0, window_bounds = array<i64: 1, 128>}, {transform_indices = @transform_1, window_bounds = array<i64: 1, 176>}]} {
    %c0 = arith.constant 0 : index
    %c0_0 = arith.constant 0 : index
    %0 = vector.load %arg1[%c0, %c0_0] : memref<1x128xf32, #tpu.memory_space<vmem>>, vector<1x128xf32>
    %1 = vector.extract_strided_slice %0 {offsets = [0, 0], sizes = [1, 16], strides = [1, 1]} : vector<1x128xf32> to vector<1x16xf32>
    %2 = vector.extract_strided_slice %1 {offsets = [0, 0], sizes = [1, 3], strides = [1, 1]} : vector<1x16xf32> to vector<1x3xf32>
    %3 = vector.extract_strided_slice %2 {offsets = [0, 2], sizes = [1, 1], strides = [1, 1]} : vector<1x3xf32> to vector<1x1xf32>
    %4 = vector.extract_strided_slice %2 {offsets = [0, 1], sizes = [1, 1], strides = [1, 1]} : vector<1x3xf32> to vector<1x1xf32>
    %5 = vector.extract_strided_slice %2 {offsets = [0, 0], sizes = [1, 1], strides = [1, 1]} : vector<1x3xf32> to vector<1x1xf32>
    %6 = tpu.concatenate %3, %4, %5 in 1 : vector<1x1xf32>, vector<1x1xf32>, vector<1x1xf32> -> vector<1x3xf32>
    %cst = arith.constant 0.000000e+00 : f32
    %7 = vector.broadcast %cst : f32 to vector<1x3xf32>
    %8 = arith.subf %7, %6 : vector<1x3xf32>
    %9 = vector.extract_strided_slice %1 {offsets = [0, 13], sizes = [1, 3], strides = [1, 1]} : vector<1x16xf32> to vector<1x3xf32>
    %10 = vector.extract_strided_slice %9 {offsets = [0, 2], sizes = [1, 1], strides = [1, 1]} : vector<1x3xf32> to vector<1x1xf32>
    %11 = vector.extract_strided_slice %9 {offsets = [0, 1], sizes = [1, 1], strides = [1, 1]} : vector<1x3xf32> to vector<1x1xf32>
    %12 = vector.extract_strided_slice %9 {offsets = [0, 0], sizes = [1, 1], strides = [1, 1]} : vector<1x3xf32> to vector<1x1xf32>
    %13 = tpu.concatenate %10, %11, %12 in 1 : vector<1x1xf32>, vector<1x1xf32>, vector<1x1xf32> -> vector<1x3xf32>
    %cst_1 = arith.constant 0.000000e+00 : f32
    %14 = vector.broadcast %cst_1 : f32 to vector<1x3xf32>
    %15 = arith.subf %14, %13 : vector<1x3xf32>
    %16 = vector.extract_strided_slice %0 {offsets = [0, 16], sizes = [1, 16], strides = [1, 1]} : vector<1x128xf32> to vector<1x16xf32>
    %17 = vector.extract_strided_slice %16 {offsets = [0, 0], sizes = [1, 3], strides = [1, 1]} : vector<1x16xf32> to vector<1x3xf32>
    %18 = vector.extract_strided_slice %17 {offsets = [0, 2], sizes = [1, 1], strides = [1, 1]} : vector<1x3xf32> to vector<1x1xf32>
    %19 = vector.extract_strided_slice %17 {offsets = [0, 1], sizes = [1, 1], strides = [1, 1]} : vector<1x3xf32> to vector<1x1xf32>
    %20 = vector.extract_strided_slice %17 {offsets = [0, 0], sizes = [1, 1], strides = [1, 1]} : vector<1x3xf32> to vector<1x1xf32>
    %21 = tpu.concatenate %18, %19, %20 in 1 : vector<1x1xf32>, vector<1x1xf32>, vector<1x1xf32> -> vector<1x3xf32>
    %cst_2 = arith.constant 0.000000e+00 : f32
    %22 = vector.broadcast %cst_2 : f32 to vector<1x3xf32>
    %23 = arith.subf %22, %21 : vector<1x3xf32>
    %24 = vector.extract_strided_slice %16 {offsets = [0, 13], sizes = [1, 3], strides = [1, 1]} : vector<1x16xf32> to vector<1x3xf32>
    %25 = vector.extract_strided_slice %24 {offsets = [0, 2], sizes = [1, 1], strides = [1, 1]} : vector<1x3xf32> to vector<1x1xf32>
    %26 = vector.extract_strided_slice %24 {offsets = [0, 1], sizes = [1, 1], strides = [1, 1]} : vector<1x3xf32> to vector<1x1xf32>
    %27 = vector.extract_strided_slice %24 {offsets = [0, 0], sizes = [1, 1], strides = [1, 1]} : vector<1x3xf32> to vector<1x1xf32>
    %28 = tpu.concatenate %25, %26, %27 in 1 : vector<1x1xf32>, vector<1x1xf32>, vector<1x1xf32> -> vector<1x3xf32>
    %cst_3 = arith.constant 0.000000e+00 : f32
    %29 = vector.broadcast %cst_3 : f32 to vector<1x3xf32>
    %30 = arith.subf %29, %28 : vector<1x3xf32>
    %31 = vector.extract_strided_slice %0 {offsets = [0, 32], sizes = [1, 16], strides = [1, 1]} : vector<1x128xf32> to vector<1x16xf32>
    %32 = vector.extract_strided_slice %31 {offsets = [0, 0], sizes = [1, 3], strides = [1, 1]} : vector<1x16xf32> to vector<1x3xf32>
    %33 = vector.extract_strided_slice %32 {offsets = [0, 2], sizes = [1, 1], strides = [1, 1]} : vector<1x3xf32> to vector<1x1xf32>
    %34 = vector.extract_strided_slice %32 {offsets = [0, 1], sizes = [1, 1], strides = [1, 1]} : vector<1x3xf32> to vector<1x1xf32>
    %35 = vector.extract_strided_slice %32 {offsets = [0, 0], sizes = [1, 1], strides = [1, 1]} : vector<1x3xf32> to vector<1x1xf32>
    %36 = tpu.concatenate %33, %34, %35 in 1 : vector<1x1xf32>, vector<1x1xf32>, vector<1x1xf32> -> vector<1x3xf32>
    %cst_4 = arith.constant 0.000000e+00 : f32
    %37 = vector.broadcast %cst_4 : f32 to vector<1x3xf32>
    %38 = arith.subf %37, %36 : vector<1x3xf32>
    %39 = vector.extract_strided_slice %31 {offsets = [0, 13], sizes = [1, 3], strides = [1, 1]} : vector<1x16xf32> to vector<1x3xf32>
    %40 = vector.extract_strided_slice %39 {offsets = [0, 2], sizes = [1, 1], strides = [1, 1]} : vector<1x3xf32> to vector<1x1xf32>
    %41 = vector.extract_strided_slice %39 {offsets = [0, 1], sizes = [1, 1], strides = [1, 1]} : vector<1x3xf32> to vector<1x1xf32>
    %42 = vector.extract_strided_slice %39 {offsets = [0, 0], sizes = [1, 1], strides = [1, 1]} : vector<1x3xf32> to vector<1x1xf32>
    %43 = tpu.concatenate %40, %41, %42 in 1 : vector<1x1xf32>, vector<1x1xf32>, vector<1x1xf32> -> vector<1x3xf32>
    %cst_5 = arith.constant 0.000000e+00 : f32
    %44 = vector.broadcast %cst_5 : f32 to vector<1x3xf32>
    %45 = arith.subf %44, %43 : vector<1x3xf32>
    %46 = vector.extract_strided_slice %0 {offsets = [0, 48], sizes = [1, 16], strides = [1, 1]} : vector<1x128xf32> to vector<1x16xf32>
    %47 = vector.extract_strided_slice %46 {offsets = [0, 0], sizes = [1, 3], strides = [1, 1]} : vector<1x16xf32> to vector<1x3xf32>
    %48 = vector.extract_strided_slice %47 {offsets = [0, 2], sizes = [1, 1], strides = [1, 1]} : vector<1x3xf32> to vector<1x1xf32>
    %49 = vector.extract_strided_slice %47 {offsets = [0, 1], sizes = [1, 1], strides = [1, 1]} : vector<1x3xf32> to vector<1x1xf32>
    %50 = vector.extract_strided_slice %47 {offsets = [0, 0], sizes = [1, 1], strides = [1, 1]} : vector<1x3xf32> to vector<1x1xf32>
    %51 = tpu.concatenate %48, %49, %50 in 1 : vector<1x1xf32>, vector<1x1xf32>, vector<1x1xf32> -> vector<1x3xf32>
    %cst_6 = arith.constant 0.000000e+00 : f32
    %52 = vector.broadcast %cst_6 : f32 to vector<1x3xf32>
    %53 = arith.subf %52, %51 : vector<1x3xf32>
    %54 = vector.extract_strided_slice %46 {offsets = [0, 13], sizes = [1, 3], strides = [1, 1]} : vector<1x16xf32> to vector<1x3xf32>
    %55 = vector.extract_strided_slice %54 {offsets = [0, 2], sizes = [1, 1], strides = [1, 1]} : vector<1x3xf32> to vector<1x1xf32>
    %56 = vector.extract_strided_slice %54 {offsets = [0, 1], sizes = [1, 1], strides = [1, 1]} : vector<1x3xf32> to vector<1x1xf32>
    %57 = vector.extract_strided_slice %54 {offsets = [0, 0], sizes = [1, 1], strides = [1, 1]} : vector<1x3xf32> to vector<1x1xf32>
    %58 = tpu.concatenate %55, %56, %57 in 1 : vector<1x1xf32>, vector<1x1xf32>, vector<1x1xf32> -> vector<1x3xf32>
    %cst_7 = arith.constant 0.000000e+00 : f32
    %59 = vector.broadcast %cst_7 : f32 to vector<1x3xf32>
    %60 = arith.subf %59, %58 : vector<1x3xf32>
    %61 = vector.extract_strided_slice %0 {offsets = [0, 64], sizes = [1, 16], strides = [1, 1]} : vector<1x128xf32> to vector<1x16xf32>
    %62 = vector.extract_strided_slice %61 {offsets = [0, 0], sizes = [1, 3], strides = [1, 1]} : vector<1x16xf32> to vector<1x3xf32>
    %63 = vector.extract_strided_slice %62 {offsets = [0, 2], sizes = [1, 1], strides = [1, 1]} : vector<1x3xf32> to vector<1x1xf32>
    %64 = vector.extract_strided_slice %62 {offsets = [0, 1], sizes = [1, 1], strides = [1, 1]} : vector<1x3xf32> to vector<1x1xf32>
    %65 = vector.extract_strided_slice %62 {offsets = [0, 0], sizes = [1, 1], strides = [1, 1]} : vector<1x3xf32> to vector<1x1xf32>
    %66 = tpu.concatenate %63, %64, %65 in 1 : vector<1x1xf32>, vector<1x1xf32>, vector<1x1xf32> -> vector<1x3xf32>
    %cst_8 = arith.constant 0.000000e+00 : f32
    %67 = vector.broadcast %cst_8 : f32 to vector<1x3xf32>
    %68 = arith.subf %67, %66 : vector<1x3xf32>
    %69 = vector.extract_strided_slice %61 {offsets = [0, 13], sizes = [1, 3], strides = [1, 1]} : vector<1x16xf32> to vector<1x3xf32>
    %70 = vector.extract_strided_slice %69 {offsets = [0, 2], sizes = [1, 1], strides = [1, 1]} : vector<1x3xf32> to vector<1x1xf32>
    %71 = vector.extract_strided_slice %69 {offsets = [0, 1], sizes = [1, 1], strides = [1, 1]} : vector<1x3xf32> to vector<1x1xf32>
    %72 = vector.extract_strided_slice %69 {offsets = [0, 0], sizes = [1, 1], strides = [1, 1]} : vector<1x3xf32> to vector<1x1xf32>
    %73 = tpu.concatenate %70, %71, %72 in 1 : vector<1x1xf32>, vector<1x1xf32>, vector<1x1xf32> -> vector<1x3xf32>
    %cst_9 = arith.constant 0.000000e+00 : f32
    %74 = vector.broadcast %cst_9 : f32 to vector<1x3xf32>
    %75 = arith.subf %74, %73 : vector<1x3xf32>
    %76 = vector.extract_strided_slice %0 {offsets = [0, 80], sizes = [1, 16], strides = [1, 1]} : vector<1x128xf32> to vector<1x16xf32>
    %77 = vector.extract_strided_slice %76 {offsets = [0, 0], sizes = [1, 3], strides = [1, 1]} : vector<1x16xf32> to vector<1x3xf32>
    %78 = vector.extract_strided_slice %77 {offsets = [0, 2], sizes = [1, 1], strides = [1, 1]} : vector<1x3xf32> to vector<1x1xf32>
    %79 = vector.extract_strided_slice %77 {offsets = [0, 1], sizes = [1, 1], strides = [1, 1]} : vector<1x3xf32> to vector<1x1xf32>
    %80 = vector.extract_strided_slice %77 {offsets = [0, 0], sizes = [1, 1], strides = [1, 1]} : vector<1x3xf32> to vector<1x1xf32>
    %81 = tpu.concatenate %78, %79, %80 in 1 : vector<1x1xf32>, vector<1x1xf32>, vector<1x1xf32> -> vector<1x3xf32>
    %cst_10 = arith.constant 0.000000e+00 : f32
    %82 = vector.broadcast %cst_10 : f32 to vector<1x3xf32>
    %83 = arith.subf %82, %81 : vector<1x3xf32>
    %84 = vector.extract_strided_slice %76 {offsets = [0, 13], sizes = [1, 3], strides = [1, 1]} : vector<1x16xf32> to vector<1x3xf32>
    %85 = vector.extract_strided_slice %84 {offsets = [0, 2], sizes = [1, 1], strides = [1, 1]} : vector<1x3xf32> to vector<1x1xf32>
    %86 = vector.extract_strided_slice %84 {offsets = [0, 1], sizes = [1, 1], strides = [1, 1]} : vector<1x3xf32> to vector<1x1xf32>
    %87 = vector.extract_strided_slice %84 {offsets = [0, 0], sizes = [1, 1], strides = [1, 1]} : vector<1x3xf32> to vector<1x1xf32>
    %88 = tpu.concatenate %85, %86, %87 in 1 : vector<1x1xf32>, vector<1x1xf32>, vector<1x1xf32> -> vector<1x3xf32>
    %cst_11 = arith.constant 0.000000e+00 : f32
    %89 = vector.broadcast %cst_11 : f32 to vector<1x3xf32>
    %90 = arith.subf %89, %88 : vector<1x3xf32>
    %91 = vector.extract_strided_slice %0 {offsets = [0, 96], sizes = [1, 16], strides = [1, 1]} : vector<1x128xf32> to vector<1x16xf32>
    %92 = vector.extract_strided_slice %91 {offsets = [0, 0], sizes = [1, 3], strides = [1, 1]} : vector<1x16xf32> to vector<1x3xf32>
    %93 = vector.extract_strided_slice %92 {offsets = [0, 2], sizes = [1, 1], strides = [1, 1]} : vector<1x3xf32> to vector<1x1xf32>
    %94 = vector.extract_strided_slice %92 {offsets = [0, 1], sizes = [1, 1], strides = [1, 1]} : vector<1x3xf32> to vector<1x1xf32>
    %95 = vector.extract_strided_slice %92 {offsets = [0, 0], sizes = [1, 1], strides = [1, 1]} : vector<1x3xf32> to vector<1x1xf32>
    %96 = tpu.concatenate %93, %94, %95 in 1 : vector<1x1xf32>, vector<1x1xf32>, vector<1x1xf32> -> vector<1x3xf32>
    %cst_12 = arith.constant 0.000000e+00 : f32
    %97 = vector.broadcast %cst_12 : f32 to vector<1x3xf32>
    %98 = arith.subf %97, %96 : vector<1x3xf32>
    %99 = vector.extract_strided_slice %91 {offsets = [0, 13], sizes = [1, 3], strides = [1, 1]} : vector<1x16xf32> to vector<1x3xf32>
    %100 = vector.extract_strided_slice %99 {offsets = [0, 2], sizes = [1, 1], strides = [1, 1]} : vector<1x3xf32> to vector<1x1xf32>
    %101 = vector.extract_strided_slice %99 {offsets = [0, 1], sizes = [1, 1], strides = [1, 1]} : vector<1x3xf32> to vector<1x1xf32>
    %102 = vector.extract_strided_slice %99 {offsets = [0, 0], sizes = [1, 1], strides = [1, 1]} : vector<1x3xf32> to vector<1x1xf32>
    %103 = tpu.concatenate %100, %101, %102 in 1 : vector<1x1xf32>, vector<1x1xf32>, vector<1x1xf32> -> vector<1x3xf32>
    %cst_13 = arith.constant 0.000000e+00 : f32
    %104 = vector.broadcast %cst_13 : f32 to vector<1x3xf32>
    %105 = arith.subf %104, %103 : vector<1x3xf32>
    %106 = vector.extract_strided_slice %0 {offsets = [0, 112], sizes = [1, 16], strides = [1, 1]} : vector<1x128xf32> to vector<1x16xf32>
    %107 = vector.extract_strided_slice %106 {offsets = [0, 0], sizes = [1, 3], strides = [1, 1]} : vector<1x16xf32> to vector<1x3xf32>
    %108 = vector.extract_strided_slice %107 {offsets = [0, 2], sizes = [1, 1], strides = [1, 1]} : vector<1x3xf32> to vector<1x1xf32>
    %109 = vector.extract_strided_slice %107 {offsets = [0, 1], sizes = [1, 1], strides = [1, 1]} : vector<1x3xf32> to vector<1x1xf32>
    %110 = vector.extract_strided_slice %107 {offsets = [0, 0], sizes = [1, 1], strides = [1, 1]} : vector<1x3xf32> to vector<1x1xf32>
    %111 = tpu.concatenate %108, %109, %110 in 1 : vector<1x1xf32>, vector<1x1xf32>, vector<1x1xf32> -> vector<1x3xf32>
    %cst_14 = arith.constant 0.000000e+00 : f32
    %112 = vector.broadcast %cst_14 : f32 to vector<1x3xf32>
    %113 = arith.subf %112, %111 : vector<1x3xf32>
    %114 = vector.extract_strided_slice %106 {offsets = [0, 13], sizes = [1, 3], strides = [1, 1]} : vector<1x16xf32> to vector<1x3xf32>
    %115 = vector.extract_strided_slice %114 {offsets = [0, 2], sizes = [1, 1], strides = [1, 1]} : vector<1x3xf32> to vector<1x1xf32>
    %116 = vector.extract_strided_slice %114 {offsets = [0, 1], sizes = [1, 1], strides = [1, 1]} : vector<1x3xf32> to vector<1x1xf32>
    %117 = vector.extract_strided_slice %114 {offsets = [0, 0], sizes = [1, 1], strides = [1, 1]} : vector<1x3xf32> to vector<1x1xf32>
    %118 = tpu.concatenate %115, %116, %117 in 1 : vector<1x1xf32>, vector<1x1xf32>, vector<1x1xf32> -> vector<1x3xf32>
    %cst_15 = arith.constant 0.000000e+00 : f32
    %119 = vector.broadcast %cst_15 : f32 to vector<1x3xf32>
    %120 = arith.subf %119, %118 : vector<1x3xf32>
    %121 = tpu.concatenate %8, %1, %15, %23, %16, %30, %38, %31, %45, %53, %46, %60, %68, %61, %75, %83 in 1 : vector<1x3xf32>, vector<1x16xf32>, vector<1x3xf32>, vector<1x3xf32>, vector<1x16xf32>, vector<1x3xf32>, vector<1x3xf32>, vector<1x16xf32>, vector<1x3xf32>, vector<1x3xf32>, vector<1x16xf32>, vector<1x3xf32>, vector<1x3xf32>, vector<1x16xf32>, vector<1x3xf32>, vector<1x3xf32> -> vector<1x113xf32>
    %122 = tpu.concatenate %76, %90, %98, %91, %105, %113, %106, %120 in 1 : vector<1x16xf32>, vector<1x3xf32>, vector<1x3xf32>, vector<1x16xf32>, vector<1x3xf32>, vector<1x3xf32>, vector<1x16xf32>, vector<1x3xf32> -> vector<1x63xf32>
    %123 = tpu.concatenate %121, %122 in 1 : vector<1x113xf32>, vector<1x63xf32> -> vector<1x176xf32>
    %c0_16 = arith.constant 0 : index
    %c0_17 = arith.constant 0 : index
    %124 = vector.load %arg2[%c0_16, %c0_17] : memref<1x176xf32, #tpu.memory_space<vmem>>, vector<1x176xf32>
    tpu.vector_store %arg2[%c0_16, %c0_17], %123 {strides = array<i32>} : memref<1x176xf32, #tpu.memory_space<vmem>>, vector<1x176xf32>,
    return
  }
  func.func @transform_0(%arg0: i32) -> (i32, i32) {
    %c0_i32 = arith.constant 0 : i32
    %c0_i32_0 = arith.constant 0 : i32
    return %arg0, %c0_i32 : i32, i32
  }
  func.func @transform_1(%arg0: i32) -> (i32, i32) {
    %c0_i32 = arith.constant 0 : i32
    %c0_i32_0 = arith.constant 0 : i32
    return %arg0, %c0_i32 : i32, i32
  }
}

</mosaic_0001>

<bundles_post_ra>
// kernel: tpu_custom_call.1
= control target key start
LH: loop header
LB: loop body
LE: loop exit
PB: predicated region body
PF: predicated region fallthrough
CT: control target
= control target key end

     0   :  { %6 = vsyncpa [#allocation3], 0  ;;  %s697_s0 = inlined_call_operand.hbm [shape: f32[1,128], index: 0, kind: input, shape index: {}]   ;;  %s698_s1 = inlined_call_operand.hbm [shape: f32[1,176], index: 1, kind: output, shape index: {}]  }
   0x1   :  { %7 = vsyncpa [#allocation4], 0  ;;  %s13_s8 = sshll.u32 %s697_s0, 4  ;;  %s479_s9 = smov [#allocation2]   ;;  %s14_s8 = int_to_ptr.hbm [resolvable:$true] %s13_s8 }
   0x2   :  { %s15_s10 = sshll.u32 %s479_s9, 4  ;;  %s16_s10 = int_to_ptr.vmem [resolvable:$true] %s15_s10 }
   0x3   :  { %18 = dma.hbm_to_vmem [thread:$0]  %s14_s8, 16, %s16_s10, [#allocation3]  }
   0x4   :  { %475 = dma.done.wait [#allocation3], 16  }
   0x5   :  { %476 = vsyncadd [#allocation3], 4294967280  ;;  %v553_v0 = vld [vmem:[#allocation2] ss:$0 sm:$0xff]  ;;  %s480_s11 = smov 113   ;;  %s481_s12 = smov 126  }
   0x6   :  { %37 = vrot.lane.b32.xlu1 %v553_v0, %s480_s11  ;;  %26 = vrot.lane.b32.xlu0 %v553_v0, %s481_s12  ;;  %s482_s13 = smov 117   ;;  %s483_s0 = smov 115   ;;  %v23_v6 = vld [vmem:[#allocation2] sm:$0x1]  ;;  %vm32_vm0 = vcmask 7168   ;;  %vm34_vm1 = vcmask 15360  }
   0x7   :  { %43 = vrot.lane.b32.xlu2 %v553_v0, %s482_s13  ;;  %s484_s14 = smov 2   ;;  %s485_s15 = smov 110   ;;  %vm266_vm2 = vcmask 23552   ;;  %vm322_vm3 = vcmask 130048   ;;  %vm268_vm4 = vcmask 154624   ;;  %vm270_vm5 = vcmask 179200  }
   0x8   :  { %s486_s16 = smov 114   ;;  %s487_s17 = smov 112   ;;  %vm326_vm6 = vcmask 310272   ;;  %vm274_vm7 = vcmask 334848   ;;  %vm276_vm8 = vcmask 359424   ;;  %vm330_vm9 = vcmask 490496  }
   0x9   :  { %s488_s18 = smov 97   ;;  %s489_s19 = smov 101   ;;  %vm272_vm10 = vcmask 203776   ;;  %vm278_vm11 = vcmask 384000   ;;  %vm280_vm12 = vcmask 515072   ;;  %vm282_vm13 = vcmask 539648  }
   0xa   :  { %s490_s20 = smov 99   ;;  %s491_s21 = smov 94   ;;  %vm284_vm14 = vcmask 564224   ;;  %vm286_vm15 = vcmask 695296  }
   0xb   :  { %s492_s22 = smov 98   ;;  %s493_s23 = smov 96  }
   0xc   :  { %s494_s24 = smov 81   ;;  %s495_s25 = smov 85  }
   0xd   :  { %s496_s26 = smov 83   ;;  %s497_s27 = smov 78  }
   0xe   :  { %40 = vrot.lane.b32.xlu1 %v553_v0, %s483_s0  ;;  %29 = vrot.lane.b32.xlu0 %v553_v0, %s484_s14  ;;  %s498_s28 = smov 82   ;;  %s499_s29 = smov 80  }
   0xf   :  { %49 = vrot.lane.b32.xlu2 %v553_v0, %s485_s15  ;;  %s500_s30 = smov 65   ;;  %s501_s2 = smov 69  }
  0x10   :  { %s502_s3 = smov 67   ;;  %s503_s4 = smov 62  }
  0x11   :  { %s504_s5 = smov 35   ;;  %s505_s6 = smov 33  }
  0x12   :  { %s506_s7 = smov 37   ;;  %s507_s8 = smov 32  }
  0x13   :  { %s508_s9 = smov 30   ;;  %s509_s10 = smov 34  }
  0x14   :  { %s510_s12 = smov 19   ;;  %s511_s13 = smov 17  }
  0x15   :  { %s512_s0 = smov 21   ;;  %s513_s14 = smov 16  }
  0x16   :  { %55 = vrot.lane.b32.xlu1 %v553_v0, %s486_s16  ;;  %52 = vrot.lane.b32.xlu0 %v553_v0, %s487_s17  ;;  %s514_s16 = smov 14   ;;  %s515_s17 = smov 18  }
  0x17   :  { %61 = vrot.lane.b32.xlu2 %v553_v0, %s488_s18  ;;  %s516_s18 = smov 3  }
  0x1e   :  { %67 = vrot.lane.b32.xlu1 %v553_v0, %s489_s19  ;;  %64 = vrot.lane.b32.xlu0 %v553_v0, %s490_s20  ;;  %s517_s19 = smov 1   ;;  %s518_s20 = smov 5  }
  0x1f   :  { %73 = vrot.lane.b32.xlu2 %v553_v0, %s491_s21  ;;  %s519_s21 = smov 64  }
  0x26   :  { %79 = vrot.lane.b32.xlu1 %v553_v0, %s492_s22  ;;  %76 = vrot.lane.b32.xlu0 %v553_v0, %s493_s23  ;;  %s520_s22 = smov 48   ;;  %s521_s23 = smov 49  }
  0x27   :  { %85 = vrot.lane.b32.xlu2 %v553_v0, %s494_s24  ;;  %s522_s24 = smov 66  }
  0x2e   :  { %91 = vrot.lane.b32.xlu1 %v553_v0, %s495_s25  ;;  %88 = vrot.lane.b32.xlu0 %v553_v0, %s496_s26  ;;  %s523_s26 = smov 54  }
  0x2f   :  { %97 = vrot.lane.b32.xlu2 %v553_v0, %s497_s27  ;;  %s524_s27 = smov 53  }
  0x36   :  { %103 = vrot.lane.b32.xlu1 %v553_v0, %s498_s28  ;;  %100 = vrot.lane.b32.xlu0 %v553_v0, %s499_s29  ;;  %s525_s28 = smov 51   ;;  %s526_s29 = smov 50  }
  0x37   :  { %109 = vrot.lane.b32.xlu2 %v553_v0, %s500_s30  ;;  %s527_s30 = smov 46  }
  0x3e   :  { %115 = vrot.lane.b32.xlu1 %v553_v0, %s501_s2  ;;  %112 = vrot.lane.b32.xlu0 %v553_v0, %s502_s3  ;;  %s528_s2 = smov 38   ;;  %s529_s3 = smov 60  }
  0x3f   :  { %121 = vrot.lane.b32.xlu2 %v553_v0, %s503_s4  ;;  %s530_s4 = smov 41  }
  0x46   :  { %160 = vrot.lane.b32.xlu1 %v553_v0, %s504_s5  ;;  %157 = vrot.lane.b32.xlu0 %v553_v0, %s505_s6  ;;  %s531_s5 = smov 22   ;;  %s532_s6 = smov 44  }
  0x47   :  { %163 = vrot.lane.b32.xlu2 %v553_v0, %s506_s7  ;;  %s533_s7 = smov 9  }
  0x4e   :  { %172 = vrot.lane.b32.xlu1 %v553_v0, %s507_s8  ;;  %169 = vrot.lane.b32.xlu0 %v553_v0, %s508_s9  ;;  %s534_s8 = smov 63   ;;  %s535_s9 = smov 15  }
  0x4f   :  { %175 = vrot.lane.b32.xlu2 %v553_v0, %s509_s10  ;;  %s536_s10 = smov 88  }
  0x56   :  { %184 = vrot.lane.b32.xlu1 %v553_v0, %s510_s12  ;;  %181 = vrot.lane.b32.xlu0 %v553_v0, %s511_s13  ;;  %s538_s13 = smov 107  }
  0x57   :  { %187 = vrot.lane.b32.xlu2 %v553_v0, %s512_s0 }
  0x5e   :  { %196 = vrot.lane.b32.xlu1 %v553_v0, %s513_s14  ;;  %193 = vrot.lane.b32.xlu0 %v553_v0, %s514_s16 }
  0x5f   :  { %199 = vrot.lane.b32.xlu2 %v553_v0, %s515_s17 }
  0x61   :  { %v44_v1 = vpop.permute.xlu2 %43 }
  0x66   :  { %208 = vrot.lane.b32.xlu1 %v553_v0, %s516_s18  ;;  %205 = vrot.lane.b32.xlu0 %v553_v0, %s517_s19 }
  0x67   :  { %211 = vrot.lane.b32.xlu2 %v553_v0, %s518_s20 }
  0x69   :  { %v50_v2 = vpop.permute.xlu2 %49 }
  0x6e   :  { %124 = vrot.lane.b32.xlu0 %v553_v0, %s519_s21  ;;  %148 = vrot.lane.b32.xlu1 %v553_v0, %s520_s22 }
  0x6f   :  { %133 = vrot.lane.b32.xlu2 %v553_v0, %s521_s23 }
  0x71   :  { %v62_v3 = vpop.permute.xlu2 %61 }
  0x76   :  { %127 = vrot.lane.b32.xlu0 %v553_v0, %s522_s24  ;;  %304 = vrot.lane.b32.xlu1 %v553_v0, %s523_s26 }
  0x77   :  { %139 = vrot.lane.b32.xlu2 %v553_v0, %s524_s27 }
  0x78   :  { %v38_v4 = vpop.permute.xlu1 %37  ;;  %v27_v5 = vpop.permute.xlu0 %26 }
  0x79   :  { %v74_v7 = vpop.permute.xlu2 %73  ;;  %v33_v8 = vsel %vm32_vm0, %v27_v5, %v23_v6 }
  0x7e   :  { %136 = vrot.lane.b32.xlu0 %v553_v0, %s525_s28 }
  0x7f   :  { %151 = vrot.lane.b32.xlu2 %v553_v0, %s526_s29 }
  0x80   :  { %v41_v9 = vpop.permute.xlu1 %40  ;;  %v30_v10 = vpop.permute.xlu0 %29 }
  0x81   :  { %v46_v11 = vsel %vm32_vm0, %v38_v4, %v41_v9  ;;  %v611_v12 = vsel %vm34_vm1, %v33_v8, %v30_v10  ;;  %v86_v14 = vpop.permute.xlu2 %85 }
  0x82   :  { %v614_v13 = vsel %vm34_vm1, %v46_v11, %v44_v1 }
  0x86   :  { %145 = vrot.lane.b32.xlu0 %v553_v0, %s527_s30 }
  0x88   :  { %v56_v15 = vpop.permute.xlu1 %55  ;;  %v53_v16 = vpop.permute.xlu0 %52 }
  0x89   :  { %v58_v17 = vsel %vm32_vm0, %v50_v2, %v53_v16  ;;  %v98_v22 = vpop.permute.xlu2 %97 }
  0x8a   :  { %v619_v18 = vsel %vm34_vm1, %v58_v17, %v56_v15 }
  0x8b   :  { %v60_v11 = vsub.f32 0.0, %v619_v18 }
  0x90   :  { %v68_v19 = vpop.permute.xlu1 %67  ;;  %v65_v20 = vpop.permute.xlu0 %64 }
  0x91   :  { %v70_v21 = vsel %vm32_vm0, %v62_v3, %v65_v20  ;;  %v110_v28 = vpop.permute.xlu2 %109  ;;  %v36_v3 = vsub.f32 0.0, %v611_v12 }
  0x92   :  { %v623_v23 = vsel %vm34_vm1, %v70_v21, %v68_v19 }
  0x93   :  { %v72_v16 = vsub.f32 0.0, %v623_v23 }
  0x98   :  { %v80_v24 = vpop.permute.xlu1 %79  ;;  %v77_v25 = vpop.permute.xlu0 %76 }
  0x99   :  { %v82_v26 = vsel %vm32_vm0, %v74_v7, %v77_v25  ;;  %v633_v33 = vpop.permute.xlu2 %121 }
  0x9a   :  { %v627_v27 = vsel %vm34_vm1, %v82_v26, %v80_v24 }
  0x9b   :  { %v84_v15 = vsub.f32 0.0, %v627_v27 }
  0xa0   :  { %v92_v29 = vpop.permute.xlu1 %91  ;;  %v89_v30 = vpop.permute.xlu0 %88 }
  0xa1   :  { %v94_v31 = vsel %vm32_vm0, %v86_v14, %v89_v30  ;;  %v164_v38 = vpop.permute.xlu2 %163  ;;  %v48_v14 = vsub.f32 0.0, %v614_v13 }
  0xa2   :  { %v631_v32 = vsel %vm34_vm1, %v94_v31, %v92_v29 }
  0xa3   :  { %v96_v19 = vsub.f32 0.0, %v631_v32 }
  0xa8   :  { %v104_v34 = vpop.permute.xlu1 %103  ;;  %v101_v35 = vpop.permute.xlu0 %100 }
  0xa9   :  { %v106_v36 = vsel %vm32_vm0, %v98_v22, %v101_v35  ;;  %v176_v46 = vpop.permute.xlu2 %175 }
  0xaa   :  { %v637_v37 = vsel %vm34_vm1, %v106_v36, %v104_v34 }
  0xab   :  { %v108_v13 = vsub.f32 0.0, %v637_v37 }
  0xb0   :  { %v116_v39 = vpop.permute.xlu1 %115  ;;  %v113_v40 = vpop.permute.xlu0 %112 }
  0xb1   :  { %v118_v41 = vsel %vm32_vm0, %v110_v28, %v113_v40  ;;  %v648_v54 = vpop.permute.xlu2 %187 }
  0xb2   :  { %v641_v42 = vsel %vm34_vm1, %v118_v41, %v116_v39 }
  0xb3   :  { %v120_v26 = vsub.f32 0.0, %v641_v42 }
  0xb8   :  { %v161_v43 = vpop.permute.xlu1 %160  ;;  %v158_v44 = vpop.permute.xlu0 %157 }
  0xb9   :  { %v166_v45 = vsel %vm32_vm0, %v158_v44, %v161_v43  ;;  %v200_v60 = vpop.permute.xlu2 %199 }
  0xba   :  { %v167_v47 = vsel %vm34_vm1, %v166_v45, %v164_v38 }
  0xbb   :  { %v168_v48 = vsub.f32 0.0, %v167_v47 }
  0xbd   :  { %297 = vrot.lane.b32.xlu2 %v168_v48, %s513_s14  ;;  %s355_s14 = sshll.u32 %s698_s1, 4  ;;  %s356_s14 = int_to_ptr.hbm [resolvable:$true] %s355_s14 }
  0xc0   :  { %v173_v49 = vpop.permute.xlu1 %172  ;;  %v170_v50 = vpop.permute.xlu0 %169 }
  0xc1   :  { %v178_v51 = vsel %vm32_vm0, %v170_v50, %v173_v49  ;;  %v212_v4 = vpop.permute.xlu2 %211 }
  0xc2   :  { %v179_v52 = vsel %vm34_vm1, %v178_v51, %v176_v46 }
  0xc3   :  { %v180_v53 = vsub.f32 0.0, %v179_v52 }
  0xc5   :  { %301 = vrot.lane.b32.xlu1 %v180_v53, %s510_s12 }
  0xc8   :  { %v185_v55 = vpop.permute.xlu1 %184  ;;  %v182_v56 = vpop.permute.xlu0 %181 }
  0xc9   :  { %v190_v57 = vsel %vm32_vm0, %v182_v56, %v185_v55  ;;  %v134_v17 = vpop.permute.xlu2 %133 }
  0xca   :  { %v191_v58 = vsel %vm34_vm1, %v190_v57, %v648_v54 }
  0xcb   :  { %v192_v59 = vsub.f32 0.0, %v191_v58 }
  0xcd   :  { %308 = vrot.lane.b32.xlu1 %v192_v59, %s528_s2 }
  0xd0   :  { %v197_v61 = vpop.permute.xlu1 %196  ;;  %v194_v62 = vpop.permute.xlu0 %193 }
  0xd1   :  { %v202_v63 = vsel %vm32_vm0, %v194_v62, %v197_v61  ;;  %v140_v20 = vpop.permute.xlu2 %139 }
  0xd2   :  { %v203_v1 = vsel %vm34_vm1, %v202_v63, %v200_v60 }
  0xd3   :  { %v204_v2 = vsub.f32 0.0, %v203_v1 }
  0xd5   :  { %315 = vrot.lane.b32.xlu1 %v553_v0, %s529_s3  ;;  %312 = vrot.lane.b32.xlu0 %v204_v2, %s530_s4 }
  0xd8   :  { %v209_v5 = vpop.permute.xlu1 %208  ;;  %v206_v6 = vpop.permute.xlu0 %205 }
  0xd9   :  { %v658_v7 = vsel %vm266_vm2, %v36_v3, %v209_v5  ;;  %v214_v8 = vsel %vm32_vm0, %v206_v6, %v209_v5  ;;  %v152_v29 = vpop.permute.xlu2 %151  ;;  %vm292_vm2 = vcmask 875520  }
  0xda   :  { %v215_v9 = vsel %vm34_vm1, %v214_v8, %v212_v4 }
  0xdb   :  { %v216_v10 = vsub.f32 0.0, %v215_v9 }
  0xdd   :  { %222 = vrot.lane.b32.xlu1 %v60_v11, %s531_s5  ;;  %218 = vrot.lane.b32.xlu0 %v48_v14, %s510_s12  ;;  %s537_s12 = smov 27   ;;  %v343_v11 = vlaneseq }
  0xde   :  { %319 = vrot.lane.b32.xlu2 %v216_v10, %s529_s3 }
  0xe0   :  { %v125_v12 = vpop.permute.xlu0 %124  ;;  %v149_v27 = vpop.permute.xlu1 %148 }
  0xe1   :  { %v130_v21 = vsel %vm32_vm0, %v633_v33, %v125_v12 }
  0xe5   :  { %233 = vrot.lane.b32.xlu1 %v84_v15, %s532_s6  ;;  %229 = vrot.lane.b32.xlu0 %v72_v16, %s530_s4 }
  0xe6   :  { %225 = vrot.lane.b32.xlu2 %v553_v0, %s533_s7 }
  0xe8   :  { %v128_v18 = vpop.permute.xlu0 %127  ;;  %v305_v35 = vpop.permute.xlu1 %304 }
  0xe9   :  { %v131_v22 = vsel %vm34_vm1, %v130_v21, %v128_v18 }
  0xea   :  { %v132_v24 = vsub.f32 0.0, %v131_v22 }
  0xed   :  { %244 = vrot.lane.b32.xlu1 %v108_v13, %s522_s24  ;;  %240 = vrot.lane.b32.xlu0 %v96_v19, %s534_s8 }
  0xee   :  { %236 = vrot.lane.b32.xlu2 %v553_v0, %s535_s9 }
  0xf0   :  { %v137_v23 = vpop.permute.xlu0 %136 }
  0xf1   :  { %v142_v25 = vsel %vm32_vm0, %v134_v17, %v137_v23 }
  0xf2   :  { %v143_v28 = vsel %vm34_vm1, %v142_v25, %v140_v20 }
  0xf3   :  { %v144_v32 = vsub.f32 0.0, %v143_v28 }
  0xf5   :  { %252 = vrot.lane.b32.xlu0 %v132_v24, %s536_s10  ;;  %255 = vrot.lane.b32.xlu1 %v553_v0, %s537_s12 }
  0xf6   :  { %248 = vrot.lane.b32.xlu2 %v120_v26, %s495_s25 }
  0xf8   :  { %v146_v30 = vpop.permute.xlu0 %145 }
  0xf9   :  { %v154_v31 = vsel %vm32_vm0, %v146_v30, %v149_v27  ;;  %vm288_vm0 = vcmask 719872  }
  0xfa   :  { %v155_v33 = vsel %vm34_vm1, %v154_v31, %v152_v29  ;;  %vm290_vm1 = vcmask 744448  }
  0xfb   :  { %v156_v34 = vsub.f32 0.0, %v155_v33 }
  0xfd   :  { %263 = vrot.lane.b32.xlu0 %v156_v34, %s485_s15 }
  0xfe   :  { %259 = vrot.lane.b32.xlu2 %v144_v32, %s538_s13 }
 0x117   :  { %v298_v0 = vpop.permute.xlu2 %297 }
 0x118   :  { %v323_v38 = vsel %vm322_vm3, %v149_v27, %v298_v0  ;;  %vm294_vm3 = vcmask 900096  }
 0x137   :  { %v302_v36 = vpop.permute.xlu1 %301 }
 0x138   :  { %v324_v39 = vsel %vm268_vm4, %v323_v38, %v302_v36  ;;  %v320_v45 = vpop.permute.xlu2 %319 }
 0x139   :  { %v325_v40 = vsel %vm270_vm5, %v324_v39, %v305_v35 }
 0x13f   :  { %v309_v37 = vpop.permute.xlu1 %308 }
 0x140   :  { %v327_v41 = vsel %vm326_vm6, %v325_v40, %v309_v37  ;;  %v226_v52 = vpop.permute.xlu2 %225  ;;  %vm345_vm6 = vcmp.lt.s32.totalorder %v343_v11, 176 }
 0x147   :  { %v316_v42 = vpop.permute.xlu1 %315  ;;  %v313_v43 = vpop.permute.xlu0 %312 }
 0x148   :  { %v328_v44 = vsel %vm274_vm7, %v327_v41, %v313_v43  ;;  %v237_v60 = vpop.permute.xlu2 %236 }
 0x149   :  { %v329_v46 = vsel %vm276_vm8, %v328_v44, %v316_v42 }
 0x14a   :  { %v331_v47 = vsel %vm330_vm9, %v329_v46, %v320_v45 }
 0x14b   :  { %333 = vrot.lane.b32.xlu1 %v331_v47, %s480_s11  ;;  %s539_s11 = smov [#allocation5]  }
 0x14c   :  { %s353_s15 = sshll.u32 %s539_s11, 4  ;;  %s354_s15 = int_to_ptr.vmem [resolvable:$true] %s353_s15 }
 0x14f   :  { %v223_v48 = vpop.permute.xlu1 %222  ;;  %v219_v49 = vpop.permute.xlu0 %218 }
 0x150   :  { %v269_v50 = vsel %vm268_vm4, %v658_v7, %v219_v49  ;;  %v249_v3 = vpop.permute.xlu2 %248  ;;  %vm336_vm4 = vcmask 924672  }
 0x151   :  { %v271_v51 = vsel %vm270_vm5, %v269_v50, %v223_v48  ;;  %vm340_vm5 = vcmask 1040384  }
 0x152   :  { %v273_v55 = vsel %vm272_vm10, %v271_v51, %v226_v52 }
 0x157   :  { %v234_v53 = vpop.permute.xlu1 %233  ;;  %v230_v56 = vpop.permute.xlu0 %229 }
 0x158   :  { %v275_v57 = vsel %vm274_vm7, %v273_v55, %v230_v56  ;;  %v260_v9 = vpop.permute.xlu2 %259 }
 0x159   :  { %v277_v58 = vsel %vm276_vm8, %v275_v57, %v234_v53 }
 0x15a   :  { %v279_v62 = vsel %vm278_vm11, %v277_v58, %v237_v60 }
 0x15f   :  { %v241_v59 = vpop.permute.xlu0 %240  ;;  %v245_v61 = vpop.permute.xlu1 %244 }
 0x160   :  { %v281_v63 = vsel %vm280_vm12, %v279_v62, %v241_v59 }
 0x161   :  { %v283_v1 = vsel %vm282_vm13, %v281_v63, %v245_v61 }
 0x162   :  { %v285_v4 = vsel %vm284_vm14, %v283_v1, %v648_v54 }
 0x163   :  { %v287_v5 = vsel %vm286_vm15, %v285_v4, %v249_v3 }
 0x167   :  { %v253_v2 = vpop.permute.xlu0 %252  ;;  %v256_v6 = vpop.permute.xlu1 %255 }
 0x168   :  { %v289_v7 = vsel %vm288_vm0, %v287_v5, %v253_v2 }
 0x169   :  { %v291_v8 = vsel %vm290_vm1, %v289_v7, %v256_v6 }
 0x16a   :  { %v293_v14 = vsel %vm292_vm2, %v291_v8, %v260_v9 }
 0x16f   :  { %v264_v10 = vpop.permute.xlu0 %263 }
 0x170   :  { %v295_v54 = vsel %vm294_vm3, %v293_v14, %v264_v10 }
 0x1bd   :  { %v334_v12 = vpop.permute.xlu1 %333 }
 0x1be   :  { %v337_v15 = vsel %vm336_vm4, %v295_v54, %v334_v12  ;;  %v339_v16 = vrot.slane %v334_v12, 7 }
 0x1c0   :  { %v341_v17 = vsel %vm340_vm5, %v337_v15, %v339_v16 }
 0x1c1   :  { %347 = vst.msk [vmem:[#allocation5] sm:$0x3] %vm345_vm6, %v341_v17 }
 0x1c2   :  { %358 = dma.vmem_to_hbm [thread:$0]  %s354_s15, 32, %s356_s14, [#allocation4]  }
 0x1c3   :  { %477 = dma.done.wait [#allocation4], 32  }
 0x1c4   :  { %478 = vsyncadd [#allocation4], 4294967264 }
 0x1c5   :  { %363 = vsyncpa [#allocation3], 1 }
 0x1c6   :  { %364 = vsyncpa [#allocation4], 1 }

</bundles_post_ra>
